<compile_context>
chip_gen: v6e
topology: v6e:2x2x1
jax: 0.10.0
libtpu: 0.0.40
codegen_flags: <defaults>
</compile_context>

<pallas_src>
import functools

import jax
import jax.numpy as jnp
from jax.experimental import pallas as pl
from jax.experimental.pallas import tpu as pltpu


def _disc_kernel(x_ref, w1_ref, b1_ref, w2_ref, b2_ref, w3r_ref, b3_ref, o_ref):
    """Full MLP forward for one batch tile.

    x_ref:  (TB, D_in)  bf16   streamed per grid step
    w*_ref: weights (bf16) / biases (f32), resident in VMEM
    b3_ref: (1, 1) f32 scalar in SMEM
    o_ref:  (1, 1, TB) f32     lane-dense output row
    """
    x = x_ref[...]
    # Layer 1: (TB, D_in) @ (D_in, H) on the MXU, f32 accumulation.
    h1 = jnp.dot(x, w1_ref[...], preferred_element_type=jnp.float32) + b1_ref[...]
    h1 = jnp.maximum(h1, 0.0).astype(w2_ref.dtype)            # ReLU, back to bf16 for MXU
    # Layer 2: (TB, H) @ (H, HP)  (HP = hidden//2 zero-padded to 128 lanes).
    h2 = jnp.dot(h1, w2_ref[...], preferred_element_type=jnp.float32) + b2_ref[...]
    h2 = jnp.maximum(h2, 0.0).astype(w3r_ref.dtype)           # (TB, HP) bf16; padded lanes are 0
    # Layer 3: (1, HP) x (TB, HP)^T -> (1, TB).  Produces a lane-dense row instead of a
    # lane-sparse (TB, 1) column, so the final store is unmasked.
    z = jax.lax.dot_general(
        w3r_ref[...], h2,
        dimension_numbers=(((1,), (1,)), ((), ())),
        preferred_element_type=jnp.float32)
    z = z + b3_ref[0, 0]                                      # scalar bias from SMEM
    # sigmoid(z) = 1 / (1 + exp(-z)); exp + approx reciprocal both run on the EUP.
    o_ref[0] = (pl.reciprocal(1.0 + jnp.exp(-z), approx=True)).astype(o_ref.dtype)


def _round_up(n, m):
    return ((n + m - 1) // m) * m


def _pick_batch_tile(batch, max_tile):
    if batch <= 256:
        return batch                                  # single grid step for tiny batches
    half = _round_up(pl.cdiv(batch, 2), 128)          # >= 2 grid steps -> both v7x TCs busy
    return min(max_tile, half)


def _prepare_params(params, compute_dtype):
    """Cast matmul weights to the MXU dtype and zero-pad hidden dims to lane width (128)."""
    w1 = params["w1"]
    b1 = params["b1"].reshape(1, -1)
    w2 = params["w2"]
    b2 = params["b2"].reshape(1, -1)
    w3 = params["w3"]
    b3 = params["b3"].reshape(1, 1)

    h = w1.shape[1]
    h2 = w2.shape[1]
    hp = _round_up(h, 128)
    h2p = _round_up(h2, 128)

    w1p = jnp.pad(w1, ((0, 0), (0, hp - h))).astype(compute_dtype)
    b1p = jnp.pad(b1, ((0, 0), (0, hp - h))).astype(jnp.float32)
    w2p = jnp.pad(w2, ((0, hp - h), (0, h2p - h2))).astype(compute_dtype)
    b2p = jnp.pad(b2, ((0, 0), (0, h2p - h2))).astype(jnp.float32)
    # Final layer stored as a row vector (1, h2p) so the kernel can do w3 @ h2^T.
    w3r = jnp.pad(w3.reshape(1, h2), ((0, 0), (0, h2p - h2))).astype(compute_dtype)
    b3s = b3.astype(jnp.float32)
    return w1p, b1p, w2p, b2p, w3r, b3s


def discriminator_forward(x, params, *, max_batch_tile=2048, compute_dtype=jnp.bfloat16):
    """x: (B, input_dim). params: dict w1,b1,w2,b2,w3,b3 with W stored as (in, out)."""
    B, d_in = x.shape
    w1p, b1p, w2p, b2p, w3r, b3s = _prepare_params(params, compute_dtype)
    hp = w1p.shape[1]
    h2p = w2p.shape[1]

    tb = _pick_batch_tile(B, max_batch_tile)
    bp = _round_up(B, tb)
    num_tiles = bp // tb

    xc = x.astype(compute_dtype)
    if bp != B:
        xc = jnp.pad(xc, ((0, bp - B), (0, 0)))       # zero rows, sliced off at the end

    # Advisory cost so XLA can overlap producers of x with this mem-bound kernel.
    flops = 2 * bp * (d_in * hp + hp * h2p + h2p)
    bytes_accessed = (
        xc.size * xc.dtype.itemsize
        + w1p.size * w1p.dtype.itemsize
        + w2p.size * w2p.dtype.itemsize
        + w3r.size * w3r.dtype.itemsize
        + (b1p.size + b2p.size + 1) * 4
        + bp * 4)
    cost = pl.CostEstimate(flops=flops, transcendentals=bp, bytes_accessed=bytes_accessed)

    # Constant block index -> fetched once, stays resident in VMEM across grid steps.
    rep = lambda shape: pl.BlockSpec(shape, lambda i: (0, 0))

    out = pl.pallas_call(
        _disc_kernel,
        out_shape=jax.ShapeDtypeStruct((num_tiles, 1, tb), jnp.float32),
        grid=(num_tiles,),
        in_specs=[
            pl.BlockSpec((tb, d_in), lambda i: (i, 0)),          # x tile (streamed)
            rep((d_in, hp)),                                     # W1
            rep((1, hp)),                                        # b1
            rep((hp, h2p)),                                      # W2
            rep((1, h2p)),                                       # b2
            rep((1, h2p)),                                       # W3 as a row
            pl.BlockSpec(memory_space=pltpu.MemorySpace.SMEM),   # b3 scalar
        ],
        out_specs=pl.BlockSpec((1, 1, tb), lambda i: (i, 0, 0)),
        compiler_params=pltpu.CompilerParams(
            dimension_semantics=("parallel",),
            vmem_limit_bytes=32 * 1024 * 1024,
        ),
        cost_estimate=cost,
    )(xc, w1p, b1p, w2p, b2p, w3r, b3s)

    # (num_tiles, 1, TB) is already in row order; present the PyTorch-shaped (B, 1) output.
    return out.reshape(bp, 1)[:B]


def init_params(key, input_dim=256, hidden_dim=128):
    """Deterministic init mimicking nn.Linear's U(-1/sqrt(fan_in), 1/sqrt(fan_in))."""
    ks = jax.random.split(key, 6)

    def lin(kw, kb, fan_in, fan_out):
        bound = 1.0 / jnp.sqrt(fan_in)
        w = jax.random.uniform(kw, (fan_in, fan_out), jnp.float32, -bound, bound)
        b = jax.random.uniform(kb, (1, fan_out), jnp.float32, -bound, bound)
        return w, b

    w1, b1 = lin(ks[0], ks[1], input_dim, hidden_dim)
    w2, b2 = lin(ks[2], ks[3], hidden_dim, hidden_dim // 2)
    w3, b3 = lin(ks[4], ks[5], hidden_dim // 2, 1)
    return {"w1": w1, "b1": b1, "w2": w2, "b2": b2, "w3": w3, "b3": b3}


def _reference(x, p):
    h1 = jnp.maximum(x @ p["w1"] + p["b1"], 0.0)
    h2 = jnp.maximum(h1 @ p["w2"] + p["b2"], 0.0)
    return jax.nn.sigmoid(h2 @ p["w3"] + p["b3"])


if __name__ == "__main__":
    key = jax.random.PRNGKey(0)
    k_param, k_x = jax.random.split(key)

    input_dim, hidden_dim, batch = 256, 128, 16
    params = init_params(k_param, input_dim, hidden_dim)
    x = jax.random.normal(k_x, (batch, input_dim), jnp.float32)

    fwd = jax.jit(functools.partial(discriminator_forward, max_batch_tile=2048))
    out = jax.block_until_ready(fwd(x, params))

    ref = _reference(x, params)
    assert out.shape == (batch, 1)
    # bf16 MXU operands with f32 accumulation -> loosened tolerance vs the pure-f32 reference.
    assert jnp.allclose(out, ref, atol=2e-2, rtol=2e-2), "mismatch vs pure-JAX reference"
    print("KERNEL_OK")
</pallas_src>

<mosaic_0001>
module attributes {stable_mosaic.version = 11 : i64} {
  func.func @_disc_kernel(%arg0: i32, %arg1: memref<16x256xbf16, #tpu.memory_space<vmem>>, %arg2: memref<256x128xbf16, #tpu.memory_space<vmem>>, %arg3: memref<1x128xf32, #tpu.memory_space<vmem>>, %arg4: memref<128x128xbf16, #tpu.memory_space<vmem>>, %arg5: memref<1x128xf32, #tpu.memory_space<vmem>>, %arg6: memref<1x128xbf16, #tpu.memory_space<vmem>>, %arg7: memref<1x1xf32, #tpu.memory_space<smem>>, %arg8: memref<1x1x16xf32, #tpu.memory_space<vmem>>) attributes {dimension_semantics = [#tpu.dimension_semantics<parallel>], iteration_bounds = array<i64: 1>, scalar_prefetch = 0 : i64, scratch_operands = 0 : i64, tpu.core_type = #tpu.core_type<tc>, window_params = [{transform_indices = @transform_0, window_bounds = array<i64: 16, 256>}, {pipeline_mode = #tpu.pipeline_mode<synchronous>, transform_indices = @transform_1, window_bounds = array<i64: 256, 128>}, {pipeline_mode = #tpu.pipeline_mode<synchronous>, transform_indices = @transform_2, window_bounds = array<i64: 1, 128>}, {pipeline_mode = #tpu.pipeline_mode<synchronous>, transform_indices = @transform_3, window_bounds = array<i64: 128, 128>}, {pipeline_mode = #tpu.pipeline_mode<synchronous>, transform_indices = @transform_4, window_bounds = array<i64: 1, 128>}, {pipeline_mode = #tpu.pipeline_mode<synchronous>, transform_indices = @transform_5, window_bounds = array<i64: 1, 128>}, {transform_indices = @transform_6, window_bounds = array<i64: 1, 1>}, {transform_indices = @transform_7, window_bounds = array<i64: 1, 1, 16>}]} {
    %c0 = arith.constant 0 : index
    %c0_0 = arith.constant 0 : index
    %0 = vector.load %arg1[%c0, %c0_0] : memref<16x256xbf16, #tpu.memory_space<vmem>>, vector<16x256xbf16>
    %c0_1 = arith.constant 0 : index
    %c0_2 = arith.constant 0 : index
    %1 = vector.load %arg2[%c0_1, %c0_2] : memref<256x128xbf16, #tpu.memory_space<vmem>>, vector<256x128xbf16>
    %cst = arith.constant dense<0.000000e+00> : vector<16x128xf32>
    %2 = tpu.matmul %0, %1, %cst {dimension_numbers = #tpu.dot_dimension_numbers<[1], [0], [0], [1], [0, 0, 1, 1], [], []>} : vector<16x256xbf16>, vector<256x128xbf16>, vector<16x128xf32> -> vector<16x128xf32>
    %c0_3 = arith.constant 0 : index
    %c0_4 = arith.constant 0 : index
    %3 = vector.load %arg3[%c0_3, %c0_4] : memref<1x128xf32, #tpu.memory_space<vmem>>, vector<1x128xf32>
    %4 = vector.broadcast %3 : vector<1x128xf32> to vector<16x128xf32>
    %5 = arith.addf %2, %4 : vector<16x128xf32>
    %cst_5 = arith.constant 0.000000e+00 : f32
    %6 = vector.broadcast %cst_5 : f32 to vector<16x128xf32>
    %7 = arith.maximumf %5, %6 : vector<16x128xf32>
    %8 = arith.truncf %7 : vector<16x128xf32> to vector<16x128xbf16>
    %c0_6 = arith.constant 0 : index
    %c0_7 = arith.constant 0 : index
    %9 = vector.load %arg4[%c0_6, %c0_7] : memref<128x128xbf16, #tpu.memory_space<vmem>>, vector<128x128xbf16>
    %cst_8 = arith.constant dense<0.000000e+00> : vector<16x128xf32>
    %10 = tpu.matmul %8, %9, %cst_8 {dimension_numbers = #tpu.dot_dimension_numbers<[1], [0], [0], [1], [0, 0, 1, 1], [], []>} : vector<16x128xbf16>, vector<128x128xbf16>, vector<16x128xf32> -> vector<16x128xf32>
    %c0_9 = arith.constant 0 : index
    %c0_10 = arith.constant 0 : index
    %11 = vector.load %arg5[%c0_9, %c0_10] : memref<1x128xf32, #tpu.memory_space<vmem>>, vector<1x128xf32>
    %12 = vector.broadcast %11 : vector<1x128xf32> to vector<16x128xf32>
    %13 = arith.addf %10, %12 : vector<16x128xf32>
    %cst_11 = arith.constant 0.000000e+00 : f32
    %14 = vector.broadcast %cst_11 : f32 to vector<16x128xf32>
    %15 = arith.maximumf %13, %14 : vector<16x128xf32>
    %16 = arith.truncf %15 : vector<16x128xf32> to vector<16x128xbf16>
    %c0_12 = arith.constant 0 : index
    %c0_13 = arith.constant 0 : index
    %17 = vector.load %arg6[%c0_12, %c0_13] : memref<1x128xbf16, #tpu.memory_space<vmem>>, vector<1x128xbf16>
    %cst_14 = arith.constant dense<0.000000e+00> : vector<1x16xf32>
    %18 = tpu.matmul %17, %16, %cst_14 {dimension_numbers = #tpu.dot_dimension_numbers<[1], [1], [0], [0], [0, 0, 1, 0], [], []>} : vector<1x128xbf16>, vector<16x128xbf16>, vector<1x16xf32> -> vector<1x16xf32>
    %c0_15 = arith.constant 0 : index
    %c0_16 = arith.constant 0 : index
    %19 = memref.load %arg7[%c0_15, %c0_16] : memref<1x1xf32, #tpu.memory_space<smem>>
    %20 = vector.broadcast %19 : f32 to vector<1x16xf32>
    %21 = arith.addf %18, %20 : vector<1x16xf32>
    %cst_17 = arith.constant 0.000000e+00 : f32
    %22 = vector.broadcast %cst_17 : f32 to vector<1x16xf32>
    %23 = arith.subf %22, %21 : vector<1x16xf32>
    %24 = math.exp %23 : vector<1x16xf32>
    %cst_18 = arith.constant 1.000000e+00 : f32
    %25 = vector.broadcast %cst_18 : f32 to vector<1x16xf32>
    %26 = arith.addf %25, %24 : vector<1x16xf32>
    %27 = tpu.reciprocal %26 {approx = true} : vector<1x16xf32> -> vector<1x16xf32>
    %c0_19 = arith.constant 0 : index
    %c0_20 = arith.constant 0 : index
    %c0_21 = arith.constant 0 : index
    %28 = vector.load %arg8[%c0_19, %c0_20, %c0_21] : memref<1x1x16xf32, #tpu.memory_space<vmem>>, vector<1x1x16xf32>
    %29 = vector.shape_cast %28 : vector<1x1x16xf32> to vector<1x16xf32>
    %30 = vector.shape_cast %27 : vector<1x16xf32> to vector<1x1x16xf32>
    tpu.vector_store %arg8[%c0_19, %c0_20, %c0_21], %30 {strides = array<i32>} : memref<1x1x16xf32, #tpu.memory_space<vmem>>, vector<1x1x16xf32>,
    return
  }
  func.func @transform_0(%arg0: i32) -> (i32, i32) {
    %c0_i32 = arith.constant 0 : i32
    %c0_i32_0 = arith.constant 0 : i32
    return %arg0, %c0_i32 : i32, i32
  }
  func.func @transform_1(%arg0: i32) -> (i32, i32) {
    %c0_i32 = arith.constant 0 : i32
    %c0_i32_0 = arith.constant 0 : i32
    %c0_i32_1 = arith.constant 0 : i32
    return %c0_i32, %c0_i32_0 : i32, i32
  }
  func.func @transform_2(%arg0: i32) -> (i32, i32) {
    %c0_i32 = arith.constant 0 : i32
    %c0_i32_0 = arith.constant 0 : i32
    %c0_i32_1 = arith.constant 0 : i32
    return %c0_i32, %c0_i32_0 : i32, i32
  }
  func.func @transform_3(%arg0: i32) -> (i32, i32) {
    %c0_i32 = arith.constant 0 : i32
    %c0_i32_0 = arith.constant 0 : i32
    %c0_i32_1 = arith.constant 0 : i32
    return %c0_i32, %c0_i32_0 : i32, i32
  }
  func.func @transform_4(%arg0: i32) -> (i32, i32) {
    %c0_i32 = arith.constant 0 : i32
    %c0_i32_0 = arith.constant 0 : i32
    %c0_i32_1 = arith.constant 0 : i32
    return %c0_i32, %c0_i32_0 : i32, i32
  }
  func.func @transform_5(%arg0: i32) -> (i32, i32) {
    %c0_i32 = arith.constant 0 : i32
    %c0_i32_0 = arith.constant 0 : i32
    %c0_i32_1 = arith.constant 0 : i32
    return %c0_i32, %c0_i32_0 : i32, i32
  }
  func.func @transform_6(%arg0: i32) -> (i32, i32) {
    %c0_i32 = arith.constant 0 : i32
    %c0_i32_0 = arith.constant 0 : i32
    %c0_i32_1 = arith.constant 0 : i32
    return %c0_i32, %c0_i32_0 : i32, i32
  }
  func.func @transform_7(%arg0: i32) -> (i32, i32, i32) {
    %c0_i32 = arith.constant 0 : i32
    %c0_i32_0 = arith.constant 0 : i32
    %c0_i32_1 = arith.constant 0 : i32
    return %arg0, %c0_i32, %c0_i32_0 : i32, i32, i32
  }
}

</mosaic_0001>

<bundles_post_ra>
// kernel: discriminator_forward.1
= control target key start
LH: loop header
LB: loop body
LE: loop exit
PB: predicated region body
PF: predicated region fallthrough
CT: control target
= control target key end

     0   :  { %v542_v2 = vmov 0.0   ;;  %s689_s0 = inlined_call_operand.vmem [shape: bf16[16,256], index: 0, kind: input, shape index: {}]   ;;  %s690_s1 = inlined_call_operand.vmem [shape: bf16[256,128], index: 1, kind: input, shape index: {}]   ;;  %s691_s2 = inlined_call_operand.vmem [shape: f32[1,128], index: 2, kind: input, shape index: {}]   ;;  %s692_s3 = inlined_call_operand.vmem [shape: bf16[128,128], index: 3, kind: input, shape index: {}]   ;;  %s693_s4 = inlined_call_operand.vmem [shape: f32[1,128], index: 4, kind: input, shape index: {}]   ;;  %s694_s5 = inlined_call_operand.vmem [shape: bf16[1,128], index: 5, kind: input, shape index: {}]   ;;  %s695_s6 = inlined_call_operand.<no memory space> [shape: f32[1,1], index: 6, kind: input, shape index: {}]   ;;  %s696_s7 = inlined_call_operand.hbm [shape: f32[1,1,16], index: 7, kind: output, shape index: {}]  }
   0x1   :  { %v489_v0 = vld [vmem:[%s690_s1 + $0x78] sm:$0xff]   ;;  %460 = vmatprep.subr.bf16.mxu1 %v542_v2  ;;  %v491_v3 = vld [vmem:[%s690_s1 + $0x70] sm:$0xff]   ;;  %v493_v5 = vld [vmem:[%s690_s1 + $0x68] sm:$0xff]  }
   0x2   :  { %v490_v1 = vld [vmem:[%s690_s1 + $0x38] sm:$0xff]   ;;  %427 = vmatprep.subr.bf16.mxu0 %v489_v0  ;;  %v492_v4 = vld [vmem:[%s690_s1 + $0x30] sm:$0xff]   ;;  %v494_v6 = vld [vmem:[%s690_s1 + $0x28] sm:$0xff]  }
   0x3   :  { %428 = vmatpush3.bf16.msra.mxu0 %v490_v1  ;;  %v495_v7 = vld [vmem:[%s690_s1 + $0x60] sm:$0xff]   ;;  %v497_v9 = vld [vmem:[%s690_s1 + $0x58] sm:$0xff]   ;;  %v499_v11 = vld [vmem:[%s690_s1 + $0x50] sm:$0xff]  }
   0x4   :  { %429 = vmatprep.subr.bf16.mxu0 %v491_v3  ;;  %v496_v8 = vld [vmem:[%s690_s1 + $0x20] sm:$0xff]   ;;  %v498_v10 = vld [vmem:[%s690_s1 + $0x18] sm:$0xff]   ;;  %v500_v12 = vld [vmem:[%s690_s1 + $0x10] sm:$0xff]  }
   0x5   :  { %v507_v13 = vld [vmem:[%s689_s0 + $0x4] ss:$8 sps:$4 sm:$0xff]   ;;  %v508_v14 = vld [vmem:[%s692_s3 + $0x38] sm:$0xff]   ;;  %v509_v16 = vld [vmem:[%s692_s3 + $0x30] sm:$0xff]  }
   0x6   :  { %v501_v15 = vld [vmem:[%s690_s1 + $0x48] sm:$0xff]   ;;  %208 = vmatprep.mubr.bf16.mxu0 %v507_v13  ;;  %461 = vmatpush3.bf16.msra.mxu1 %v508_v14  ;;  %v503_v18 = vld [vmem:[%s690_s1 + $0x40] sm:$0xff]  }
   0x7   :  { %430 = vmatpush3.bf16.msra.mxu0 %v492_v4  ;;  %v502_v17 = vld [vmem:[%s690_s1 + $0x8] sm:$0xff]   ;;  %462 = vmatprep.subr.bf16.mxu1 %v542_v2 }
   0x8   :  { %431 = vmatprep.subr.bf16.mxu0 %v493_v5  ;;  %v510_v19 = vld [vmem:[%s692_s3 + $0x28] sm:$0xff]  }
   0xa   :  { %463 = vmatpush3.bf16.msra.mxu1 %v509_v16 }
   0xb   :  { %432 = vmatpush3.bf16.msra.mxu0 %v494_v6 }
   0xc   :  { %433 = vmatprep.subr.bf16.mxu0 %v495_v7 }
   0xf   :  { %434 = vmatpush3.bf16.msra.mxu0 %v496_v8 }
  0x10   :  { %435 = vmatprep.subr.bf16.mxu0 %v497_v9 }
  0x13   :  { %436 = vmatpush3.bf16.msra.mxu0 %v498_v10 }
  0x14   :  { %437 = vmatprep.subr.bf16.mxu0 %v499_v11 }
  0x17   :  { %438 = vmatpush3.bf16.msra.mxu0 %v500_v12 }
  0x18   :  { %439 = vmatprep.subr.bf16.mxu0 %v501_v15 }
  0x19   :  { %13 = vsyncpa [#allocation4], 0  ;;  %464 = vmatprep.subr.bf16.mxu1 %v542_v2  ;;  %v504_v20 = vld [vmem:[%s690_s1] sm:$0xff]   ;;  %v512_v23 = vld [vmem:[%s692_s3 + $0x18] sm:$0xff]   ;;  %vm543_vm0 = vmmov 0   ;;  %v337_v50 = vstv %s695_s6  ;;  %vm383_vm1 = vcmask 122880  }
  0x1a   :  { %465 = vmatpush3.bf16.msra.mxu1 %v510_v19  ;;  %v511_v21 = vld [vmem:[%s692_s3 + $0x20] sm:$0xff]   ;;  %v513_v24 = vld [vmem:[%s692_s3 + $0x10] sm:$0xff]   ;;  %v514_v25 = vld [vmem:[%s692_s3 + $0x8] sm:$0xff]   ;;  %476 = vmatprep.mubr.msk.bf16.mxu1 %vm543_vm0, %v542_v2 }
  0x1b   :  { %440 = vmatpush3.bf16.msra.mxu0 %v502_v17  ;;  %466 = vmatprep.subr.bf16.mxu1 %v542_v2  ;;  %v505_v22 = vld [vmem:[%s689_s0] ss:$8 sps:$4 sm:$0xff]  }
  0x1c   :  { %441 = vmatprep.subr.bf16.mxu0 %v503_v18  ;;  %v515_v26 = vld [vmem:[%s692_s3] sm:$0xff]  }
  0x1d   :  { %v399_v30 = vld [vmem:[%s691_s2] ss:$0 sm:$0xff] }
  0x1e   :  { %467 = vmatpush3.bf16.msra.mxu1 %v511_v21  ;;  %v418_v39 = vld [vmem:[%s693_s4] ss:$0 sm:$0xff]  ;;  %s544_s4 = smov [#allocation3]  }
  0x1f   :  { %442 = vmatpush3.bf16.msra.mxu0 %v504_v20  ;;  %468 = vmatprep.subr.bf16.mxu1 %v542_v2  ;;  %v335_v49 = vld [vmem:[%s694_s5] sm:$0x1]  ;;  %s391_s11 = sshll.u32 %s544_s4, 4  ;;  %s392_s11 = int_to_ptr.vmem [resolvable:$true] %s391_s11 }
  0x20   :  { %480 = vmatprep.subr.bf16.mxu0 %v542_v2  ;;  %s520_s5 = scalar_lea.vmem %s392_s11, 16  ;;  %s524_s6 = scalar_lea.vmem %s392_s11, 32 }
  0x21   :  { %p521_p0 = scmp.ne.s32.totalorder %s392_s11, %s520_s5  ;;  %p525_p1 = scmp.lt.s32.totalorder %s392_s11, %s392_s11 }
  0x22   :  { %209 = vmatmul.mubr.bf16.vlgmr.msra.gmra.mxu0 %v505_v22  ;;  %469 = vmatpush3.bf16.msra.mxu1 %v512_v23  ;;  %p526_p2 = scmp.lt.s32.totalorder %s524_s6, %s520_s5 }
  0x23   :  { %470 = vmatprep.subr.bf16.mxu1 %v542_v2  ;;  %482 = vmatprep.mubr.msk.bf16.mxu0 %vm543_vm0, %v542_v2 }
  0x24   :  { %p527_p3 = por %p526_p2, %p525_p1 }
  0x26   :  { %471 = vmatpush3.bf16.msra.mxu1 %v513_v24  ;;  %p528_p4 = pnand %p527_p3, %p521_p0 }
  0x27   :  { %472 = vmatprep.subr.bf16.mxu1 %v542_v2 }
  0x2a   :  { %473 = vmatpush3.bf16.msra.mxu1 %v514_v25 }
  0x2b   :  { %474 = vmatprep.subr.bf16.mxu1 %v542_v2 }
  0x2e   :  { %475 = vmatpush3.bf16.msra.mxu1 %v515_v26 }
  0xe2   :  { %v443_v27 = vpop.f32.mrf.mxu0 }
  0xe4   :  { %v444_v28 = vpop.f32.mrf.mxu0 }
  0xe5   :  { %v445_v29 = vadd.f32 %v444_v28, %v443_v27 }
  0xe6   :  { %v446_v31 = vpop.f32.mrf.mxu0 }
  0xe7   :  { %v211_v33 = vadd.f32 %v445_v29, %v399_v30 }
  0xe8   :  { %v447_v32 = vpop.f32.mrf.mxu0 }
  0xe9   :  { %v448_v34 = vadd.f32 %v447_v32, %v446_v31  ;;  %v217_v36 = vmax.f32 %v211_v33, 0.0 }
  0xeb   :  { %v214_v35 = vadd.f32 %v448_v34, %v399_v30 }
  0xed   :  { %v218_v37 = vmax.f32 %v214_v35, 0.0 }
  0xef   :  { %v219_v38 = vpack.c.bf16 %v218_v37, %v217_v36 }
  0xf1   :  { %477 = vmatmul.mubr.bf16.vlgmr.msra.gmra.mxu1 %v219_v38 }
 0x1b1   :  { %v325_v40 = vpop.f32.mrf.mxu1 }
 0x1b2   :  { %v326_v42 = vadd.f32 %v418_v39, %v325_v40 }
 0x1b3   :  { %v478_v41 = vpop.f32.mrf.mxu1 }
 0x1b4   :  { %v332_v46 = vmax.f32 %v326_v42, 0.0 }
 0x1b5   :  { %v328_v43 = vpop.f32.mrf.mxu1 }
 0x1b6   :  { %v329_v44 = vadd.f32 %v418_v39, %v328_v43 }
 0x1b7   :  { %v479_v45 = vpop.f32.mrf.mxu1 }
 0x1b8   :  { %v333_v47 = vmax.f32 %v329_v44, 0.0 }
 0x1ba   :  { %v334_v48 = vpack.c.bf16 %v333_v47, %v332_v46 }
 0x1bc   :  { %481 = vmatpush3.bf16.xpose.msra.mxu0 %v334_v48 }
 0x1c3   :  { %483 = vmatmul.mubr.bf16.vlgmr.msra.gmra.mxu0 %v335_v49 }
 0x283   :  { %v372_v51 = vpop.f32.mrf.mxu0 }
 0x284   :  { %v373_v52 = vadd.f32 %v372_v51, %v337_v50 }
 0x285   :  { %v484_v53 = vpop.f32.mrf.mxu0 }
 0x286   :  { %v378_v54 = vsub.f32 0.0, %v373_v52 }
 0x287   :  { %v375_v55 = vpop.f32.mrf.mxu0 }
 0x288   :  { %v379_v56 = vmul.f32 1.442695, %v378_v54 }
 0x289   :  { %v485_v57 = vpop.f32.mrf.mxu0 }
 0x28a   :  { %516 = vpow2.f32 %v379_v56 }
 0x297   :  { %v517_v58 = vpop.eup %516 }
 0x298   :  { %v381_v59 = vadd.f32 1.0, %v517_v58 }
 0x29a   :  { %518 = vrcp.f32 %v381_v59 }
 0x2a7   :  { %v519_v60 = vpop.eup %518 }
 0x2a8   :  { %384 = vst.msk [vmem:[#allocation3] sm:$0x1] %vm383_vm1, %v519_v60 }
 0x2a9   :  { %531 = shalt.err (!%p528_p4)
}
 0x2aa   :  { %394 = dma.vmem_to_hbm [thread:$0]  %s392_s11, 16, %s696_s7, [#allocation4]  }
 0x2ab   :  { %540 = dma.done.wait [#allocation4], 16  }
 0x2ac   :  { %541 = vsyncadd [#allocation4], 4294967280 }
 0x2ad   :  { %398 = vsyncpa [#allocation4], 1 }

</bundles_post_ra>
